<compile_context>
chip_gen: v7x
topology: tpu7x:2x2x1
jax: 0.10.0
libtpu: 0.0.40
codegen_flags: <defaults>
</compile_context>

<pallas_src>
import jax
import jax.numpy as jnp
from jax.experimental import pallas as pl
from jax.experimental.pallas import tpu as pltpu


def _dma_copy_kernel(x_hbm, o_hbm, sem):
    # Whole-array HBM->HBM DMA; bypasses VMEM and vregs completely.
    cp = pltpu.make_async_copy(x_hbm, o_hbm, sem)
    cp.start()
    cp.wait()


# Below this size the pallas_call launch / DMA setup overhead (order-µs)
# exceeds the copy time; use the metadata-only reshape instead.
_SMALL_CUTOFF_BYTES = 256 << 10


def _flatten_out_shape(shape, d):
    lead = shape[:d]
    k = 1
    for s in shape[d:]:
        k *= s
    return lead + (k,)


def flatten_pallas(feat: jax.Array,
                   dim: int = -1,
                   *,
                   materialize: bool = True,
                   min_kernel_bytes: int = _SMALL_CUTOFF_BYTES) -> jax.Array:
    """Equivalent of torch.flatten(feat, start_dim=dim).

    materialize=True routes the (pure) copy through a single HBM->HBM DMA in a
    Pallas kernel; materialize=False, empty inputs, or inputs smaller than
    `min_kernel_bytes` use the metadata-only reshape.
    """
    ndim = feat.ndim
    if ndim == 0:
        # torch.flatten on a 0-d tensor yields a 1-element 1-d tensor.
        return feat.reshape((1,))

    d = dim % ndim  # PyTorch-style negative-dim normalization
    out_shape = _flatten_out_shape(feat.shape, d)

    nbytes = feat.size * jnp.dtype(feat.dtype).itemsize
    if (not materialize) or feat.size == 0 or nbytes < min_kernel_bytes:
        # Pure layout change: no kernel needed.
        return feat.reshape(out_shape)

    copied = pl.pallas_call(
        _dma_copy_kernel,
        out_shape=jax.ShapeDtypeStruct(feat.shape, feat.dtype),
        in_specs=[pl.BlockSpec(memory_space=pl.ANY)],
        out_specs=pl.BlockSpec(memory_space=pl.ANY),
        scratch_shapes=[pltpu.SemaphoreType.DMA(())],
    )(feat)

    # Trailing metadata-only reshape restores the flattened view.
    return copied.reshape(out_shape)


if __name__ == "__main__":
    key = jax.random.PRNGKey(0)
    # Small NCHW input consistent with a resnet feature map.
    x = jax.random.normal(key, (2, 4, 16, 16), dtype=jnp.float32)

    # Case 1: module default dim=-1 (flatten from last dim -> shape unchanged),
    # default cutoff -> metadata-only path.
    y_default = jax.block_until_ready(flatten_pallas(x, dim=-1))
    assert y_default.shape == (2, 4, 16, 16)
    assert jnp.array_equal(y_default, x)

    # Case 2: typical resnet usage, Flatten(dim=1) -> [N, C*H*W].
    # Force the DMA kernel path (min_kernel_bytes=0) to exercise the Pallas copy.
    y1 = jax.block_until_ready(flatten_pallas(x, dim=1, min_kernel_bytes=0))
    assert y1.shape == (2, 1024)
    assert jnp.array_equal(y1, x.reshape(2, 4 * 16 * 16))

    # Case 3: bf16 dtype through the kernel path.
    xb = x.astype(jnp.bfloat16)
    yb = jax.block_until_ready(flatten_pallas(xb, dim=1, min_kernel_bytes=0))
    assert yb.shape == (2, 1024)
    assert jnp.array_equal(yb, xb.reshape(2, 1024))

    # Case 4: odd (non-128-multiple) element count — whole-array DMA has no
    # lane-tiling requirement, so the kernel path handles it directly.
    x_odd = jax.random.normal(key, (2, 3, 5, 7), dtype=jnp.float32)
    y_odd = jax.block_until_ready(flatten_pallas(x_odd, dim=1, min_kernel_bytes=0))
    assert y_odd.shape == (2, 105)
    assert jnp.array_equal(y_odd, x_odd.reshape(2, 105))

    # Case 5: small-tensor cutoff (default) -> metadata-only reshape, same result.
    y_small = jax.block_until_ready(flatten_pallas(x, dim=1))
    assert y_small.shape == (2, 1024)
    assert jnp.array_equal(y_small, y1)

    print("KERNEL_OK")
</pallas_src>

<mosaic_0001>
module attributes {stable_mosaic.version = 11 : i64} {
  func.func @_dma_copy_kernel(%arg0: memref<2x4x16x16xf32, #tpu.memory_space<any>>, %arg1: memref<2x4x16x16xf32, #tpu.memory_space<any>>, %arg2: memref<!tpu.dma_semaphore, #tpu.memory_space<semaphore_mem>>) attributes {dimension_semantics = [], scalar_prefetch = 0 : i64, scratch_operands = 1 : i64, tpu.core_type = #tpu.core_type<tc>} {
    tpu.enqueue_dma source(%arg0 : memref<2x4x16x16xf32, #tpu.memory_space<any>>) target(%arg1 : memref<2x4x16x16xf32, #tpu.memory_space<any>>) target_semaphore(%arg2 : memref<!tpu.dma_semaphore, #tpu.memory_space<semaphore_mem>>)
    tpu.wait_dma2 semaphore(%arg2 : memref<!tpu.dma_semaphore, #tpu.memory_space<semaphore_mem>>) src(%arg0 : memref<2x4x16x16xf32, #tpu.memory_space<any>>) dst(%arg1 : memref<2x4x16x16xf32, #tpu.memory_space<any>>)
    return
  }
}

</mosaic_0001>

<bundles_post_ra>
// kernel: tpu_custom_call.1
= control target key start
LH: loop header
LB: loop body
LE: loop exit
PB: predicated region body
PF: predicated region fallthrough
CT: control target
= control target key end

     0   :  { %s36_s6 = smov [#allocation2]   ;;  %s37_s7 = smov [#allocation3]   ;;  %s55_s0 = inlined_call_operand.hbm [shape: f32[2,4,16,16], index: 0, kind: input, shape index: {}]   ;;  %s56_s1 = inlined_call_operand.hbm [shape: f32[2,4,16,16], index: 1, kind: output, shape index: {}]  }
   0x1   :  { %s38_s8 = smov 0  }
   0x2   :  { %18 = dma.general %s55_s0, 2048, %s56_s1, %s36_s6, %s37_s7, [#allocation4], %s38_s8, 0  }
   0x3   :  { %34 = dma.done.wait [#allocation2], 2048 }
   0x4   :  { %35 = vsyncadd [#allocation2], 4294965248 }
   0x5   :  { %24 = vsyncmov [#allocation2] }
   0x8   :  { %s25_s13 = vpop.sfrf %24 }
   0x9   :  { %p30_p0 = scmp.ne.s32.totalorder %s25_s13, 0 }
   0xb   :  { %29 = shalt.err (%p30_p0)  }

</bundles_post_ra>
